<compile_context>
chip_gen: v6e
topology: v6e:2x2x1
jax: 0.10.0
libtpu: 0.0.40
codegen_flags: <defaults>
</compile_context>

<pallas_src>
import jax
import jax.numpy as jnp
from jax import lax
from jax.experimental import pallas as pl
from jax.experimental.pallas import tpu as pltpu

KH = KW = 3          # conv kernel size
PAD = 1              # 'same' padding for 3x3


# --------------------------------------------------------------------------- #
# Pallas kernel: one fused GEMM + bias-map add per (batch block, spatial tile) #
# --------------------------------------------------------------------------- #
def coordconv_kernel(cols_ref, w_ref, bmap_ref, o_ref):
    """out[i, cout, p] = sum_k w[cout, k] * cols[i, k, p] + bmap[cout, p].

    cols_ref: (Bt, K, tHW)   im2col patches, K = KH*KW*Cin, spatial on lanes
    w_ref:    (Cout, K)      flattened conv weights for the real input channels
    bmap_ref: (Cout, tHW)    precomputed AddCoords contribution + conv bias (f32)
    o_ref:    (Bt, Cout, tHW)
    """
    w = w_ref[...]
    bmap = bmap_ref[...]
    for i in range(cols_ref.shape[0]):          # static Bt, unrolled
        acc = jnp.dot(w, cols_ref[i], preferred_element_type=jnp.float32)
        o_ref[i] = (acc + bmap).astype(o_ref.dtype)


# --------------------------------------------------------------------------- #
# Wrapper-side glue (layout prep only; all conv math runs in the kernel)       #
# --------------------------------------------------------------------------- #
def _coord_bias_map(w_coord, bias, H, W):
    """Fold AddCoords: conv contribution of the xx/yy channels + scalar bias.

    Exact AddCoords(with_r=False) semantics: xx varies along dim 2 (x_dim = H),
    yy varies along dim 3 (y_dim = W), both normalized to [-1, 1].
    Returns a (Cout, H*W) float32 map (batch independent).
    """
    Cout = w_coord.shape[0]
    # Guard degenerate dims (torch would produce nan via 0/0 here).
    xx = ((jnp.arange(H, dtype=jnp.float32) / (H - 1)) * 2.0 - 1.0
          if H > 1 else jnp.zeros((H,), jnp.float32))
    yy = ((jnp.arange(W, dtype=jnp.float32) / (W - 1)) * 2.0 - 1.0
          if W > 1 else jnp.zeros((W,), jnp.float32))
    xx_ch = jnp.broadcast_to(xx[:, None], (H, W))
    yy_ch = jnp.broadcast_to(yy[None, :], (H, W))
    coords = jnp.stack([xx_ch, yy_ch], axis=0)                    # (2, H, W)
    coords_pad = jnp.pad(coords, ((0, 0), (PAD, PAD), (PAD, PAD)))

    bmap = jnp.zeros((Cout, H, W), jnp.float32)
    for kh in range(KH):
        for kw in range(KW):
            wk = w_coord[:, :, kh, kw].astype(jnp.float32)        # (Cout, 2)
            bmap = bmap + jnp.einsum(
                'oc,chw->ohw', wk, coords_pad[:, kh:kh + H, kw:kw + W])
    bmap = bmap + bias.astype(jnp.float32)[:, None, None]
    return bmap.reshape(Cout, H * W)


def _im2col(x, H, W):
    """(B, Cin, H, W) -> (B, KH*KW*Cin, H*W); K ordered as (kh, kw, ci)."""
    B, Cin = x.shape[0], x.shape[1]
    x_pad = jnp.pad(x, ((0, 0), (0, 0), (PAD, PAD), (PAD, PAD)))
    taps = [x_pad[:, :, kh:kh + H, kw:kw + W]
            for kh in range(KH) for kw in range(KW)]
    cols = jnp.concatenate(taps, axis=1)                          # (B, 9*Cin, H, W)
    return cols.reshape(B, KH * KW * Cin, H * W)


def _pick_spatial_tile(hw, target):
    """Largest multiple of 128 that divides hw and is <= target (else full hw)."""
    if hw <= target or hw % 128 != 0:
        return hw
    t = min(target, hw)
    t -= t % 128
    while t >= 128 and hw % t != 0:
        t -= 128
    return t if t >= 128 else hw


def _largest_divisor_leq(n, cap):
    cap = max(1, min(n, cap))
    for d in range(cap, 0, -1):
        if n % d == 0:
            return d
    return 1


def coord_conv(x, w, bias, *, compute_dtype=jnp.bfloat16, spatial_tile=8192):
    """CoordConv forward: AddCoords + 3x3 same-padded Conv2d (Pallas kernel).

    x:    (B, Cin, H, W)
    w:    (Cout, Cin + 2, 3, 3)   Conv2d weight (last two in-channels = xx, yy)
    bias: (Cout,)
    Returns (B, Cout, H, W) in x.dtype.
    """
    B, Cin, H, W = x.shape
    Cout, Cin_aug = w.shape[0], w.shape[1]
    assert Cin_aug == Cin + 2, (Cin_aug, Cin)
    HW = H * W
    K = KH * KW * Cin

    # AddCoords folded into a per-pixel bias map (kept in f32).
    bmap = _coord_bias_map(w[:, Cin:], bias, H, W)                # (Cout, HW)

    # im2col of the real input channels; merges all 9 taps into one GEMM K dim.
    cols = _im2col(x.astype(compute_dtype), H, W)                 # (B, K, HW)
    # (Cout, Cin, KH, KW) -> (Cout, KH, KW, Cin) -> (Cout, K), matching im2col K order.
    w_flat = jnp.transpose(w[:, :Cin], (0, 2, 3, 1)).reshape(Cout, K)
    w_flat = w_flat.astype(compute_dtype)

    # Tiling: spatial tiles of <= `spatial_tile` lanes; fold small batches so
    # each grid step moves a reasonable chunk of data.
    t_hw = _pick_spatial_tile(HW, spatial_tile)
    bt = _largest_divisor_leq(B, max(1, spatial_tile // HW)) if t_hw == HW else 1
    grid = (B // bt, HW // t_hw)

    out = pl.pallas_call(
        coordconv_kernel,
        out_shape=jax.ShapeDtypeStruct((B, Cout, HW), x.dtype),
        grid=grid,
        in_specs=[
            pl.BlockSpec((bt, K, t_hw), lambda b, j: (b, 0, j)),
            pl.BlockSpec((Cout, K), lambda b, j: (0, 0)),
            pl.BlockSpec((Cout, t_hw), lambda b, j: (0, j)),
        ],
        out_specs=pl.BlockSpec((bt, Cout, t_hw), lambda b, j: (b, 0, j)),
        compiler_params=pltpu.CompilerParams(
            dimension_semantics=("parallel", "parallel"),
            vmem_limit_bytes=32 * 1024 * 1024),
    )(cols, w_flat, bmap)

    # (B, Cout, HW) -> (B, Cout, H, W): pure reshape, no data movement.
    return out.reshape(B, Cout, H, W)


# --------------------------------------------------------------------------- #
# Pure-JAX reference (direct translation of the PyTorch module)                #
# --------------------------------------------------------------------------- #
def add_coords(x_nchw):
    b, _, H, W = x_nchw.shape
    xx = (jnp.arange(H, dtype=jnp.float32) / (H - 1)) * 2.0 - 1.0
    yy = (jnp.arange(W, dtype=jnp.float32) / (W - 1)) * 2.0 - 1.0
    xx_ch = jnp.broadcast_to(xx[:, None], (b, 1, H, W)).astype(x_nchw.dtype)
    yy_ch = jnp.broadcast_to(yy[None, :], (b, 1, H, W)).astype(x_nchw.dtype)
    return jnp.concatenate([x_nchw, xx_ch, yy_ch], axis=1)


def reference_coord_conv(x_nchw, w_oihw, bias):
    xa = add_coords(x_nchw)
    out = lax.conv_general_dilated(
        xa, w_oihw, window_strides=(1, 1), padding=((PAD, PAD), (PAD, PAD)),
        dimension_numbers=("NCHW", "OIHW", "NCHW"))
    return out + bias[None, :, None, None]


if __name__ == "__main__":
    # Shapes consistent with CoordConv(in_channels=4, out_channels=8, kernel_size=3, padding=1)
    B, C_IN, H, W = 2, 4, 16, 16
    C_OUT = 8
    C_AUG = C_IN + 2  # AddCoords appends xx and yy channels

    key = jax.random.PRNGKey(0)
    kx, kw_, kb = jax.random.split(key, 3)

    x = jax.random.normal(kx, (B, C_IN, H, W), dtype=jnp.float32)
    fan_in = C_AUG * KH * KW
    bound = 1.0 / (fan_in ** 0.5)
    w = jax.random.uniform(kw_, (C_OUT, C_AUG, KH, KW), jnp.float32,
                           minval=-bound, maxval=bound)
    bias = jax.random.uniform(kb, (C_OUT,), jnp.float32,
                              minval=-bound, maxval=bound)

    ref = jax.block_until_ready(reference_coord_conv(x, w, bias))

    # f32 compute path: tight check against the lax.conv reference.
    out_f32 = jax.block_until_ready(coord_conv(x, w, bias,
                                               compute_dtype=jnp.float32))
    assert out_f32.shape == (B, C_OUT, H, W), out_f32.shape
    err32 = jnp.max(jnp.abs(out_f32 - ref))
    assert jnp.allclose(out_f32, ref, atol=1e-3, rtol=1e-3), \
        f"f32 max abs err {err32}"

    # bf16 compute path (default; halves HBM traffic): looser tolerance.
    out_bf16 = jax.block_until_ready(coord_conv(x, w, bias))
    assert out_bf16.shape == (B, C_OUT, H, W), out_bf16.shape
    err16 = jnp.max(jnp.abs(out_bf16 - ref))
    assert jnp.allclose(out_bf16, ref, atol=5e-2, rtol=5e-2), \
        f"bf16 max abs err {err16}"

    print("KERNEL_OK")
</pallas_src>

<mosaic_0001>
module attributes {stable_mosaic.version = 11 : i64} {
  func.func @coordconv_kernel(%arg0: i32, %arg1: i32, %arg2: memref<2x36x256xf32, #tpu.memory_space<vmem>>, %arg3: memref<8x36xf32, #tpu.memory_space<vmem>>, %arg4: memref<8x256xf32, #tpu.memory_space<vmem>>, %arg5: memref<2x8x256xf32, #tpu.memory_space<vmem>>) attributes {dimension_semantics = [#tpu.dimension_semantics<parallel>, #tpu.dimension_semantics<parallel>], iteration_bounds = array<i64: 1, 1>, scalar_prefetch = 0 : i64, scratch_operands = 0 : i64, tpu.core_type = #tpu.core_type<tc>, window_params = [{transform_indices = @transform_0, window_bounds = array<i64: 2, 36, 256>}, {pipeline_mode = #tpu.pipeline_mode<synchronous>, transform_indices = @transform_1, window_bounds = array<i64: 8, 36>}, {transform_indices = @transform_2, window_bounds = array<i64: 8, 256>}, {transform_indices = @transform_3, window_bounds = array<i64: 2, 8, 256>}]} {
    %c0 = arith.constant 0 : index
    %c0_0 = arith.constant 0 : index
    %0 = vector.load %arg3[%c0, %c0_0] : memref<8x36xf32, #tpu.memory_space<vmem>>, vector<8x36xf32>
    %c0_1 = arith.constant 0 : index
    %c0_2 = arith.constant 0 : index
    %1 = vector.load %arg4[%c0_1, %c0_2] : memref<8x256xf32, #tpu.memory_space<vmem>>, vector<8x256xf32>
    %c0_3 = arith.constant 0 : index
    %c0_4 = arith.constant 0 : index
    %c0_5 = arith.constant 0 : index
    %2 = vector.load %arg2[%c0_3, %c0_4, %c0_5] : memref<2x36x256xf32, #tpu.memory_space<vmem>>, vector<1x36x256xf32>
    %3 = vector.shape_cast %2 : vector<1x36x256xf32> to vector<36x256xf32>
    %cst = arith.constant dense<0.000000e+00> : vector<8x256xf32>
    %4 = tpu.matmul %0, %3, %cst {dimension_numbers = #tpu.dot_dimension_numbers<[1], [0], [0], [1], [0, 0, 1, 1], [], []>} : vector<8x36xf32>, vector<36x256xf32>, vector<8x256xf32> -> vector<8x256xf32>
    %5 = arith.addf %4, %1 : vector<8x256xf32>
    %c0_6 = arith.constant 0 : index
    %c0_7 = arith.constant 0 : index
    %c0_8 = arith.constant 0 : index
    %6 = vector.load %arg5[%c0_6, %c0_7, %c0_8] : memref<2x8x256xf32, #tpu.memory_space<vmem>>, vector<1x8x256xf32>
    %7 = vector.shape_cast %6 : vector<1x8x256xf32> to vector<8x256xf32>
    %8 = vector.shape_cast %5 : vector<8x256xf32> to vector<1x8x256xf32>
    tpu.vector_store %arg5[%c0_6, %c0_7, %c0_8], %8 {strides = array<i32>} : memref<2x8x256xf32, #tpu.memory_space<vmem>>, vector<1x8x256xf32>,
    %c1 = arith.constant 1 : index
    %c0_9 = arith.constant 0 : index
    %c0_10 = arith.constant 0 : index
    %9 = vector.load %arg2[%c1, %c0_9, %c0_10] : memref<2x36x256xf32, #tpu.memory_space<vmem>>, vector<1x36x256xf32>
    %10 = vector.shape_cast %9 : vector<1x36x256xf32> to vector<36x256xf32>
    %cst_11 = arith.constant dense<0.000000e+00> : vector<8x256xf32>
    %11 = tpu.matmul %0, %10, %cst_11 {dimension_numbers = #tpu.dot_dimension_numbers<[1], [0], [0], [1], [0, 0, 1, 1], [], []>} : vector<8x36xf32>, vector<36x256xf32>, vector<8x256xf32> -> vector<8x256xf32>
    %12 = arith.addf %11, %1 : vector<8x256xf32>
    %c1_12 = arith.constant 1 : index
    %c0_13 = arith.constant 0 : index
    %c0_14 = arith.constant 0 : index
    %13 = vector.load %arg5[%c1_12, %c0_13, %c0_14] : memref<2x8x256xf32, #tpu.memory_space<vmem>>, vector<1x8x256xf32>
    %14 = vector.shape_cast %13 : vector<1x8x256xf32> to vector<8x256xf32>
    %15 = vector.shape_cast %12 : vector<8x256xf32> to vector<1x8x256xf32>
    tpu.vector_store %arg5[%c1_12, %c0_13, %c0_14], %15 {strides = array<i32>} : memref<2x8x256xf32, #tpu.memory_space<vmem>>, vector<1x8x256xf32>,
    return
  }
  func.func @transform_0(%arg0: i32, %arg1: i32) -> (i32, i32, i32) {
    %c0_i32 = arith.constant 0 : i32
    %c0_i32_0 = arith.constant 0 : i32
    return %arg0, %c0_i32, %arg1 : i32, i32, i32
  }
  func.func @transform_1(%arg0: i32, %arg1: i32) -> (i32, i32) {
    %c0_i32 = arith.constant 0 : i32
    %c0_i32_0 = arith.constant 0 : i32
    %c0_i32_1 = arith.constant 0 : i32
    return %c0_i32, %c0_i32_0 : i32, i32
  }
  func.func @transform_2(%arg0: i32, %arg1: i32) -> (i32, i32) {
    %c0_i32 = arith.constant 0 : i32
    %c0_i32_0 = arith.constant 0 : i32
    return %c0_i32, %arg1 : i32, i32
  }
  func.func @transform_3(%arg0: i32, %arg1: i32) -> (i32, i32, i32) {
    %c0_i32 = arith.constant 0 : i32
    %c0_i32_0 = arith.constant 0 : i32
    return %arg0, %c0_i32, %arg1 : i32, i32, i32
  }
}

</mosaic_0001>

<bundles_post_ra>
// kernel: tpu_custom_call.1
= control target key start
LH: loop header
LB: loop body
LE: loop exit
PB: predicated region body
PF: predicated region fallthrough
CT: control target
= control target key end

     0   :  { %vm32_vm0 = vcmask 1043456   ;;  %s357_s0 = inlined_call_operand.vmem [shape: f32[2,36,256], index: 0, kind: input, shape index: {}]   ;;  %s358_s1 = inlined_call_operand.vmem [shape: f32[8,36], index: 1, kind: input, shape index: {}]   ;;  %s359_s2 = inlined_call_operand.vmem [shape: f32[8,256], index: 2, kind: input, shape index: {}]   ;;  %s360_s3 = inlined_call_operand.hbm [shape: f32[2,8,256], index: 3, kind: output, shape index: {}]  }
   0x1   :  { %v27_v0 = vld [vmem:[%s357_s0 + $0x48] sm:$0xf]  ;;  %v231_v1 = vld [vmem:[%s357_s0 + $0x98] sm:$0xf]  ;;  %v26_v3 = vld [vmem:[%s357_s0 + $0x40] sm:$0xf] }
   0x2   :  { %v25_v2 = vld [vmem:[%s357_s0 + $0x38] sm:$0xff]  ;;  %219 = vmatprep.subr.msk.mxu0 %vm32_vm0, %v27_v0  ;;  %232 = vmatprep.subr.msk.mxu1 %vm32_vm0, %v231_v1  ;;  %v230_v4 = vld [vmem:[%s357_s0 + $0x90] sm:$0xf]  ;;  %v229_v5 = vld [vmem:[%s357_s0 + $0x88] sm:$0xff] }
   0x3   :  { %220 = vmatpush1.msk.msra.mxu0 %vm32_vm0, %v26_v3  ;;  %233 = vmatpush1.msk.msra.mxu1 %vm32_vm0, %v230_v4  ;;  %v24_v6 = vld [vmem:[%s357_s0 + $0x30] sm:$0xff]  ;;  %v228_v7 = vld [vmem:[%s357_s0 + $0x80] sm:$0xff]  ;;  %v23_v8 = vld [vmem:[%s357_s0 + $0x28] sm:$0xff] }
   0x4   :  { %63 = vmatprep.subr.mxu0 %v25_v2  ;;  %153 = vmatprep.subr.mxu1 %v229_v5  ;;  %v227_v9 = vld [vmem:[%s357_s0 + $0x78] sm:$0xff]  ;;  %v22_v10 = vld [vmem:[%s357_s0 + $0x20] sm:$0xff]  ;;  %v226_v11 = vld [vmem:[%s357_s0 + $0x70] sm:$0xff] }
   0x5   :  { %64 = vmatpush1.msra.mxu0 %v24_v6  ;;  %154 = vmatpush1.msra.mxu1 %v228_v7  ;;  %v21_v12 = vld [vmem:[%s357_s0 + $0x18] sm:$0xff]  ;;  %v225_v13 = vld [vmem:[%s357_s0 + $0x68] sm:$0xff]  ;;  %v20_v14 = vld [vmem:[%s357_s0 + $0x10] sm:$0xff] }
   0x6   :  { %65 = vmatprep.subr.mxu0 %v23_v8  ;;  %155 = vmatprep.subr.mxu1 %v227_v9  ;;  %v224_v15 = vld [vmem:[%s357_s0 + $0x60] sm:$0xff]  ;;  %v19_v16 = vld [vmem:[%s357_s0 + $0x8] sm:$0xff]  ;;  %v223_v17 = vld [vmem:[%s357_s0 + $0x58] sm:$0xff] }
   0x7   :  { %66 = vmatpush1.msra.mxu0 %v22_v10  ;;  %156 = vmatpush1.msra.mxu1 %v226_v11  ;;  %v18_v18 = vld [vmem:[%s357_s0] sm:$0xff] }
   0x8   :  { %67 = vmatprep.subr.mxu0 %v21_v12  ;;  %157 = vmatprep.subr.mxu1 %v225_v13 }
   0x9   :  { %8 = vsyncpa [#allocation3], 0  ;;  %68 = vmatpush1.msra.mxu0 %v20_v14  ;;  %158 = vmatpush1.msra.mxu1 %v224_v15  ;;  %v222_v19 = vld [vmem:[%s357_s0 + $0x50] sm:$0xff]  ;;  %v15_v20 = vld [vmem:[%s358_s1] sm:$0xff]  ;;  %vm28_vm1 = vcmask 293888   ;;  %v261_v21 = vmov 0.0  }
   0xa   :  { %69 = vmatprep.subr.mxu0 %v19_v16  ;;  %159 = vmatprep.subr.mxu1 %v223_v17  ;;  %v16_v22 = vld [vmem:[%s359_s2] sm:$0xff]  ;;  %s262_s29 = smov [#allocation2]   ;;  %v17_v25 = vld [vmem:[%s359_s2 + $0x8] sm:$0xff] }
   0xb   :  { %70 = vmatpush1.msra.mxu0 %v18_v18  ;;  %103 = vmatprep.mubr.f32.mxu0 %v261_v21  ;;  %s208_s0 = sshll.u32 %s262_s29, 4  ;;  %s209_s0 = int_to_ptr.vmem [resolvable:$true] %s208_s0 }
   0xc   :  { %160 = vmatpush1.msra.mxu1 %v222_v19  ;;  %193 = vmatprep.mubr.f32.mxu1 %v261_v21  ;;  %s239_s1 = scalar_lea.vmem %s209_s0, 512  ;;  %p244_p1 = scmp.lt.s32.totalorder %s209_s0, %s209_s0 }
   0xd   :  { %221 = vmatmul.mubr.msk.f32.vlgmr.msra.gmra.mxu0 %vm28_vm1, %v15_v20  ;;  %234 = vmatmul.mubr.msk.f32.vlgmr.msra.gmra.mxu1 %vm28_vm1, %v15_v20  ;;  %p240_p0 = scmp.ne.s32.totalorder %s209_s0, %s239_s1  ;;  %p245_p2 = scmp.lt.s32.totalorder %s239_s1, %s239_s1 }
   0xf   :  { %p246_p3 = por %p245_p2, %p244_p1 }
  0x11   :  { %p247_p4 = pnand %p246_p3, %p240_p0 }
  0xcd   :  { %v105_v23 = vpop.f32.mrf.mxu0  ;;  %v195_v24 = vpop.f32.mrf.mxu1 }
  0xce   :  { %v106_v26 = vadd.f32 %v105_v23, %v16_v22  ;;  %v196_v27 = vadd.f32 %v195_v24, %v16_v22 }
  0xcf   :  { %v107_v28 = vpop.f32.mrf.mxu0  ;;  %v197_v29 = vpop.f32.mrf.mxu1 }
  0xd0   :  { %110 = vst [vmem:[#allocation2] sm:$0xff] %v106_v26  ;;  %201 = vst [vmem:[#allocation2 + $0x10] sm:$0xff] %v196_v27  ;;  %v108_v30 = vadd.f32 %v107_v28, %v17_v25  ;;  %v198_v31 = vadd.f32 %v197_v29, %v17_v25 }
  0xd2   :  { %111 = vst [vmem:[#allocation2 + $0x8] sm:$0xff] %v108_v30  ;;  %202 = vst [vmem:[#allocation2 + $0x18] sm:$0xff] %v198_v31 }
  0xd3   :  { %250 = shalt.err (!%p247_p4)
}
  0xd4   :  { %s263_s5 = smov 256   ;;  %s264_s2 = smov 16  }
  0xd5   :  { %214 = dma.vmem_to_hbm [thread:$0]  %s209_s0, 512, %s360_s3, [#allocation3], %s263_s5, %s263_s5, %s264_s2  }
  0xd6   :  { %259 = dma.done.wait [#allocation3], 512  }
  0xd7   :  { %260 = vsyncadd [#allocation3], 4294966784 }
  0xd8   :  { %218 = vsyncpa [#allocation3], 1 }

</bundles_post_ra>
